<compile_context>
chip_gen: v6e
topology: v6e:2x2x1
jax: 0.10.0
libtpu: 0.0.40
codegen_flags: <defaults>
</compile_context>

<pallas_src>
import jax
import jax.numpy as jnp
from jax.experimental import pallas as pl
from jax.experimental.pallas import tpu as pltpu


def _round_up(x, m):
    return (x + m - 1) // m * m


def _staged_sum(a):
    """Reduce to a scalar: channel axis first (pure VPU adds across vregs),
    then the sublane axis, with a single cross-lane reduce last."""
    while a.ndim > 2:
        a = jnp.sum(a, axis=0)
    a = jnp.sum(a, axis=0, keepdims=True)   # (1, W): sublane reduce
    return jnp.sum(a)                       # one cross-lane (XLU) reduce


# ----------------------------------------------------------------------------
# Kernel factory (closes over the static shape / tiling parameters)
# ----------------------------------------------------------------------------
def _make_kernel(C, Cm, H, W, TH, KT):
    single_mask = (Cm == 1)

    def kernel(pred_ref, mask_ref, out_ref, carry_p_ref, carry_m_ref):
        k = pl.program_id(1)      # H-tile index ('arbitrary', innermost)
        base = k * TH             # first global row of this tile

        # TODO(synk): on v6e/v7x keep bf16 preds in bf16 through the diffs and
        # cast to f32 only at the reductions (v5e has no bf16 VALU).
        p = pred_ref[0].astype(jnp.float32)     # (C, TH, W)
        m = mask_ref[0].astype(jnp.float32)     # (Cm, TH, W)

        zero = jnp.float32(0.0)
        y_num = zero
        x_num = zero
        m_y = zero
        m_x = zero

        # ---- x-direction: pairs (w, w+1), weight mask[..., w] ---------------
        # NOTE: the off-by-one slices materialize small tile-sized temporaries,
        # but with ~2 MiB tiles the kernel stays HBM-bound with ample
        # VMEM/VALU slack.
        # TODO(synk): switch to pltpu.roll + boundary-lane masks once verified
        # on all target generations to shave the relayout copies.
        if W > 1:
            x_abs = jnp.abs(p[:, :, :-1] - p[:, :, 1:])          # (C, TH, W-1)
            rx = jax.lax.broadcasted_iota(jnp.int32, (TH, W - 1), 0)
            x_ok = rx < (H - base)            # row validity (partial last tile)
            if single_mask:
                wx = jnp.where(x_ok, m[0, :, :-1], zero)          # (TH, W-1)
                dx = jnp.where(x_ok, jnp.sum(x_abs, axis=0), zero)
                x_num = _staged_sum(dx * wx)
                m_x = _staged_sum(wx)
            else:
                wx = jnp.where(x_ok[None], m[:, :, :-1], zero)
                dx = jnp.where(x_ok[None], x_abs, zero)
                x_num = _staged_sum(dx * wx)
                m_x = _staged_sum(wx)

        # ---- y-direction, pairs inside the tile: (r, r+1), weight mask[r] ---
        if TH > 1:
            y_abs = jnp.abs(p[:, :-1, :] - p[:, 1:, :])          # (C, TH-1, W)
            ry = jax.lax.broadcasted_iota(jnp.int32, (TH - 1, W), 0)
            y_ok = ry < ((H - 1) - base)
            if single_mask:
                wy = jnp.where(y_ok, m[0, :-1, :], zero)
                dy = jnp.where(y_ok, jnp.sum(y_abs, axis=0), zero)
                y_num = y_num + _staged_sum(dy * wy)
                m_y = m_y + _staged_sum(wy)
            else:
                wy = jnp.where(y_ok[None], m[:, :-1, :], zero)
                dy = jnp.where(y_ok[None], y_abs, zero)
                y_num = y_num + _staged_sum(dy * wy)
                m_y = m_y + _staged_sum(wy)

        # ---- y-direction, tile-boundary pair (base-1, base) via carry row ---
        if KT > 1:
            # Valid only when base >= 1 (k > 0).  Use a NaN-safe vector select
            # so stale carry data at k == 0 can never leak into the sums.
            b_ok = (jax.lax.broadcasted_iota(jnp.int32, (1, W), 0) + base) >= 1
            cp = carry_p_ref[...]                                 # (C, 1, W)
            cm = carry_m_ref[...]                                 # (Cm, 1, W)
            b_abs = jnp.abs(p[:, 0:1, :] - cp)                    # (C, 1, W)
            if single_mask:
                wb = jnp.where(b_ok, cm[0], zero)                 # (1, W)
                db = jnp.where(b_ok, jnp.sum(b_abs, axis=0), zero)
                y_num = y_num + _staged_sum(db * wb)
                m_y = m_y + _staged_sum(wb)
            else:
                wb = jnp.where(b_ok[None], cm, zero)
                db = jnp.where(b_ok[None], b_abs, zero)
                y_num = y_num + _staged_sum(db * wb)
                m_y = m_y + _staged_sum(wb)

            # Save this tile's last row for the next tile's boundary pair.
            # Non-last tiles are always full, so row TH-1 is valid whenever
            # the carry is actually read.
            carry_p_ref[...] = p[:, TH - 1:TH, :]
            carry_m_ref[...] = m[:, TH - 1:TH, :]

        # ---- accumulate the 4 per-sample partials in the resident output ----
        rows = jax.lax.broadcasted_iota(jnp.int32, (8, 128), 0)
        partial = jnp.where(rows == 0, y_num,
                  jnp.where(rows == 1, x_num,
                  jnp.where(rows == 2, m_y,
                  jnp.where(rows == 3, m_x, zero))))

        @pl.when(k == 0)
        def _():
            out_ref[...] = jnp.zeros_like(out_ref)

        out_ref[...] += partial

    return kernel


# ----------------------------------------------------------------------------
# Wrapper
# ----------------------------------------------------------------------------
def masked_tv_loss(pred, mask, loss_weight=1.0, tile_h=None):
    if mask is None:
        # The torch module would crash on mask=None; require it explicitly.
        raise ValueError("MaskedTVLoss requires a mask of shape (N, 1, H, W).")

    pred = jnp.asarray(pred)
    mask = jnp.asarray(mask)
    N, C, H, W = pred.shape
    Nm, Cm, Hm, Wm = mask.shape
    if Nm != N or Hm != H or Wm != W or Cm not in (1, C):
        raise ValueError(f"Incompatible mask shape {mask.shape} for pred {pred.shape}")

    # ---- H-tile size: ~2 MiB of pred+mask per tile (measured 1-4 MiB HBM
    # roofline sweet spot); multiple of 8 sublanes unless the whole height
    # fits in one tile (full-dim block waives the divisibility constraint). ---
    lane_pad = _round_up(W, 128)
    bytes_per_row = (C * lane_pad * pred.dtype.itemsize
                     + Cm * lane_pad * mask.dtype.itemsize)
    if tile_h is not None:
        th = max(8, (int(tile_h) // 8) * 8)
    else:
        target_tile_bytes = 2 * 1024 * 1024
        th = max(8, (target_tile_bytes // max(bytes_per_row, 1)) // 8 * 8)
    TH = H if th >= H else th
    KT = (H + TH - 1) // TH
    # TODO(synk): add channel/width tiling for samples whose single 8-row slab
    # already exceeds the VMEM budget (very large C*W).
    # TODO(synk): for N == 1 on v7x (2 TensorCores), split the H-tile axis
    # across cores with per-core partial outputs combined here.

    # ---- explicit VMEM budget: double-buffered input blocks + the f32
    # temporaries the kernel materializes + carry rows + output block. --------
    def _tile_bytes(c, rows, itemsize):
        return c * _round_up(max(rows, 1), 8) * lane_pad * itemsize

    pred_blk = _tile_bytes(C, TH, pred.dtype.itemsize)
    mask_blk = _tile_bytes(Cm, TH, mask.dtype.itemsize)
    pred_f32 = _tile_bytes(C, TH, 4)
    mask_f32 = _tile_bytes(Cm, TH, 4)
    carry_b = _tile_bytes(C, 1, 4) + _tile_bytes(Cm, 1, 4)
    vmem_est = (2 * (pred_blk + mask_blk)        # input blocks, double-buffered
                + 8 * pred_f32 + 4 * mask_f32    # cast/diff/abs/where temporaries
                + carry_b + 2 * 8 * 128 * 4 + (1 << 20))
    # 48 MiB is safe headroom on every generation (v7x has 64 MiB physical VMEM).
    vmem_limit = int(min(max(vmem_est, 32 * 1024 * 1024), 48 * 1024 * 1024))

    cost = pl.CostEstimate(
        flops=int(N * (8 * C + 2 * Cm) * H * W),
        transcendentals=0,
        bytes_accessed=int(pred.size * pred.dtype.itemsize
                           + mask.size * mask.dtype.itemsize
                           + N * 8 * 128 * 4),
    )

    kernel = _make_kernel(C, Cm, H, W, TH, KT)

    out = pl.pallas_call(
        kernel,
        out_shape=jax.ShapeDtypeStruct((N * 8, 128), jnp.float32),
        grid=(N, KT),
        in_specs=[
            pl.BlockSpec((1, C, TH, W), lambda n, k: (n, 0, k, 0)),
            pl.BlockSpec((1, Cm, TH, W), lambda n, k: (n, 0, k, 0)),
        ],
        out_specs=pl.BlockSpec((8, 128), lambda n, k: (n, 0)),
        scratch_shapes=[
            pltpu.VMEM((C, 1, W), jnp.float32),    # carried last pred row
            pltpu.VMEM((Cm, 1, W), jnp.float32),   # carried last mask row
        ],
        compiler_params=pltpu.CompilerParams(
            dimension_semantics=("parallel", "arbitrary"),
            vmem_limit_bytes=vmem_limit,
        ),
        cost_estimate=cost,
    )(pred, mask)

    tiles = out.reshape(N, 8, 128)
    y_num = jnp.sum(tiles[:, 0, 0])
    x_num = jnp.sum(tiles[:, 1, 0])
    m_y = jnp.sum(tiles[:, 2, 0])
    m_x = jnp.sum(tiles[:, 3, 0])

    # mmagic mask_reduce_loss expands an (N,1,H,W) mask to (N,C,H,W) before
    # summing the denominator -> scale by C when the mask has a single channel.
    den_scale = jnp.float32(C // Cm)
    eps = jnp.float32(1e-12)
    y_loss = loss_weight * y_num / (den_scale * m_y + eps)
    x_loss = loss_weight * x_num / (den_scale * m_x + eps)
    return x_loss + y_loss


class MaskedTVLoss:
    """JAX/Pallas equivalent of mmagic MaskedTVLoss.forward
    (inherits L1Loss with reduction='mean', sample_wise=False)."""

    def __init__(self, loss_weight=1.0):
        self.loss_weight = float(loss_weight)

    def __call__(self, pred, mask=None):
        return masked_tv_loss(pred, mask, loss_weight=self.loss_weight)


# ----------------------------------------------------------------------------
# Demo / self-test
# ----------------------------------------------------------------------------
if __name__ == "__main__":
    key = jax.random.PRNGKey(0)
    k1, k2, k3, k4, k5 = jax.random.split(key, 5)

    # Plain-JAX reference mirroring mmagic masked_loss / mask_reduce_loss math.
    def ref_masked_tv(pred_f32, mask_f32, lw=1.0):
        eps = 1e-12
        ydiff = jnp.abs(pred_f32[:, :, :-1, :] - pred_f32[:, :, 1:, :])
        wy = jnp.broadcast_to(mask_f32[:, :, :-1, :], ydiff.shape)
        y = lw * jnp.sum(ydiff * wy) / (jnp.sum(wy) + eps)
        xdiff = jnp.abs(pred_f32[:, :, :, :-1] - pred_f32[:, :, :, 1:])
        wx = jnp.broadcast_to(mask_f32[:, :, :, :-1], xdiff.shape)
        x = lw * jnp.sum(xdiff * wx) / (jnp.sum(wx) + eps)
        return x + y

    # 1) Small NCHW case with an (N,1,H,W) mask (single-H-tile path).
    N, C, H, W = 2, 4, 16, 16
    pred = jax.random.normal(k1, (N, C, H, W), dtype=jnp.float32)
    mask = jax.random.bernoulli(k2, 0.7, (N, 1, H, W)).astype(jnp.float32)
    out = jax.block_until_ready(MaskedTVLoss(loss_weight=1.0)(pred, mask))
    ref = ref_masked_tv(pred, mask)
    assert jnp.allclose(out, ref, rtol=1e-5, atol=1e-6), (out, ref)

    # 2) bf16 prediction (cast in-kernel), per-channel mask, non-unit weight.
    mask_c = jax.random.bernoulli(k3, 0.5, (N, C, H, W)).astype(jnp.float32)
    pred_bf16 = pred.astype(jnp.bfloat16)
    out2 = jax.block_until_ready(MaskedTVLoss(loss_weight=2.5)(pred_bf16, mask_c))
    ref2 = ref_masked_tv(pred_bf16.astype(jnp.float32), mask_c, lw=2.5)
    assert jnp.allclose(out2, ref2, rtol=1e-3, atol=1e-3), (out2, ref2)

    # 3) Multi-H-tile path with a partial last tile: exercises the carried
    #    boundary row and the row-validity masking (H=20 tiled at 8 rows,
    #    W=144 not lane-aligned).
    N3, C3, H3, W3 = 2, 3, 20, 144
    pred3 = jax.random.normal(k4, (N3, C3, H3, W3), dtype=jnp.float32)
    mask3 = jax.random.bernoulli(k5, 0.6, (N3, 1, H3, W3)).astype(jnp.float32)
    out3 = jax.block_until_ready(masked_tv_loss(pred3, mask3, tile_h=8))
    ref3 = ref_masked_tv(pred3, mask3)
    assert jnp.allclose(out3, ref3, rtol=1e-4, atol=1e-5), (out3, ref3)

    print("KERNEL_OK")
</pallas_src>

<mosaic_0001>
module attributes {stable_mosaic.version = 11 : i64} {
  func.func @kernel(%arg0: i32, %arg1: i32, %arg2: memref<1x4x16x16xf32, #tpu.memory_space<vmem>>, %arg3: memref<1x1x16x16xf32, #tpu.memory_space<vmem>>, %arg4: memref<8x128xf32, #tpu.memory_space<vmem>>, %arg5: memref<4x1x16xf32, #tpu.memory_space<vmem>>, %arg6: memref<1x1x16xf32, #tpu.memory_space<vmem>>) attributes {dimension_semantics = [#tpu.dimension_semantics<parallel>, #tpu.dimension_semantics<arbitrary>], iteration_bounds = array<i64: 2, 1>, scalar_prefetch = 0 : i64, scratch_operands = 2 : i64, tpu.core_type = #tpu.core_type<tc>, window_params = [{transform_indices = @transform_0, window_bounds = array<i64: 1, 4, 16, 16>}, {transform_indices = @transform_1, window_bounds = array<i64: 1, 1, 16, 16>}, {transform_indices = @transform_2, window_bounds = array<i64: 8, 128>}]} {
    %c16_i32 = arith.constant 16 : i32
    %0 = arith.muli %arg1, %c16_i32 : i32
    %c0 = arith.constant 0 : index
    %c0_0 = arith.constant 0 : index
    %c0_1 = arith.constant 0 : index
    %c0_2 = arith.constant 0 : index
    %1 = vector.load %arg2[%c0, %c0_0, %c0_1, %c0_2] : memref<1x4x16x16xf32, #tpu.memory_space<vmem>>, vector<1x4x16x16xf32>
    %2 = vector.shape_cast %1 : vector<1x4x16x16xf32> to vector<4x16x16xf32>
    %c0_3 = arith.constant 0 : index
    %c0_4 = arith.constant 0 : index
    %c0_5 = arith.constant 0 : index
    %c0_6 = arith.constant 0 : index
    %3 = vector.load %arg3[%c0_3, %c0_4, %c0_5, %c0_6] : memref<1x1x16x16xf32, #tpu.memory_space<vmem>>, vector<1x1x16x16xf32>
    %4 = vector.shape_cast %3 : vector<1x1x16x16xf32> to vector<1x16x16xf32>
    %5 = vector.extract_strided_slice %2 {offsets = [0, 0, 0], sizes = [4, 16, 15], strides = [1, 1, 1]} : vector<4x16x16xf32> to vector<4x16x15xf32>
    %6 = vector.extract_strided_slice %2 {offsets = [0, 0, 1], sizes = [4, 16, 15], strides = [1, 1, 1]} : vector<4x16x16xf32> to vector<4x16x15xf32>
    %7 = arith.subf %5, %6 : vector<4x16x15xf32>
    %8 = math.absf %7 : vector<4x16x15xf32>
    %9 = tpu.iota {dimensions = array<i32: 0>} : vector<16x15xi32>
    %c16_i32_7 = arith.constant 16 : i32
    %10 = arith.subi %c16_i32_7, %0 : i32
    %11 = vector.broadcast %10 : i32 to vector<16x15xi32>
    %12 = arith.cmpi slt, %9, %11 : vector<16x15xi32>
    %13 = vector.extract_strided_slice %4 {offsets = [0, 0, 0], sizes = [1, 16, 15], strides = [1, 1, 1]} : vector<1x16x16xf32> to vector<1x16x15xf32>
    %14 = vector.shape_cast %13 : vector<1x16x15xf32> to vector<16x15xf32>
    %cst = arith.constant 0.000000e+00 : f32
    %15 = vector.broadcast %cst : f32 to vector<16x15xf32>
    %16 = arith.select %12, %14, %15 : vector<16x15xi1>, vector<16x15xf32>
    %cst_8 = arith.constant dense<0.000000e+00> : vector<16x15xf32>
    %17 = vector.multi_reduction <add>, %8, %cst_8 [0] : vector<4x16x15xf32> to vector<16x15xf32>
    %cst_9 = arith.constant 0.000000e+00 : f32
    %18 = vector.broadcast %cst_9 : f32 to vector<16x15xf32>
    %19 = arith.select %12, %17, %18 : vector<16x15xi1>, vector<16x15xf32>
    %20 = arith.mulf %19, %16 : vector<16x15xf32>
    %cst_10 = arith.constant dense<0.000000e+00> : vector<15xf32>
    %21 = vector.multi_reduction <add>, %20, %cst_10 [0] : vector<16x15xf32> to vector<15xf32>
    %22 = vector.shape_cast %21 : vector<15xf32> to vector<1x15xf32>
    %23 = vector.shape_cast %22 : vector<1x15xf32> to vector<1x1x15xf32>
    %cst_11 = arith.constant dense<0.000000e+00> : vector<1xf32>
    %24 = vector.multi_reduction <add>, %23, %cst_11 [1, 2] : vector<1x1x15xf32> to vector<1xf32>
    %25 = vector.shape_cast %24 : vector<1xf32> to vector<1x1x1xf32>
    %26 = vector.extract %25[0, 0, 0] : f32 from vector<1x1x1xf32>
    %cst_12 = arith.constant dense<0.000000e+00> : vector<15xf32>
    %27 = vector.multi_reduction <add>, %16, %cst_12 [0] : vector<16x15xf32> to vector<15xf32>
    %28 = vector.shape_cast %27 : vector<15xf32> to vector<1x15xf32>
    %29 = vector.shape_cast %28 : vector<1x15xf32> to vector<1x1x15xf32>
    %cst_13 = arith.constant dense<0.000000e+00> : vector<1xf32>
    %30 = vector.multi_reduction <add>, %29, %cst_13 [1, 2] : vector<1x1x15xf32> to vector<1xf32>
    %31 = vector.shape_cast %30 : vector<1xf32> to vector<1x1x1xf32>
    %32 = vector.extract %31[0, 0, 0] : f32 from vector<1x1x1xf32>
    %33 = vector.extract_strided_slice %2 {offsets = [0, 0, 0], sizes = [4, 15, 16], strides = [1, 1, 1]} : vector<4x16x16xf32> to vector<4x15x16xf32>
    %34 = vector.extract_strided_slice %2 {offsets = [0, 1, 0], sizes = [4, 15, 16], strides = [1, 1, 1]} : vector<4x16x16xf32> to vector<4x15x16xf32>
    %35 = arith.subf %33, %34 : vector<4x15x16xf32>
    %36 = math.absf %35 : vector<4x15x16xf32>
    %37 = tpu.iota {dimensions = array<i32: 0>} : vector<15x16xi32>
    %c15_i32 = arith.constant 15 : i32
    %38 = arith.subi %c15_i32, %0 : i32
    %39 = vector.broadcast %38 : i32 to vector<15x16xi32>
    %40 = arith.cmpi slt, %37, %39 : vector<15x16xi32>
    %41 = vector.extract_strided_slice %4 {offsets = [0, 0, 0], sizes = [1, 15, 16], strides = [1, 1, 1]} : vector<1x16x16xf32> to vector<1x15x16xf32>
    %42 = vector.shape_cast %41 : vector<1x15x16xf32> to vector<15x16xf32>
    %cst_14 = arith.constant 0.000000e+00 : f32
    %43 = vector.broadcast %cst_14 : f32 to vector<15x16xf32>
    %44 = arith.select %40, %42, %43 : vector<15x16xi1>, vector<15x16xf32>
    %cst_15 = arith.constant dense<0.000000e+00> : vector<15x16xf32>
    %45 = vector.multi_reduction <add>, %36, %cst_15 [0] : vector<4x15x16xf32> to vector<15x16xf32>
    %cst_16 = arith.constant 0.000000e+00 : f32
    %46 = vector.broadcast %cst_16 : f32 to vector<15x16xf32>
    %47 = arith.select %40, %45, %46 : vector<15x16xi1>, vector<15x16xf32>
    %48 = arith.mulf %47, %44 : vector<15x16xf32>
    %cst_17 = arith.constant dense<0.000000e+00> : vector<16xf32>
    %49 = vector.multi_reduction <add>, %48, %cst_17 [0] : vector<15x16xf32> to vector<16xf32>
    %50 = vector.shape_cast %49 : vector<16xf32> to vector<1x16xf32>
    %51 = vector.shape_cast %50 : vector<1x16xf32> to vector<1x1x16xf32>
    %cst_18 = arith.constant dense<0.000000e+00> : vector<1xf32>
    %52 = vector.multi_reduction <add>, %51, %cst_18 [1, 2] : vector<1x1x16xf32> to vector<1xf32>
    %53 = vector.shape_cast %52 : vector<1xf32> to vector<1x1x1xf32>
    %54 = vector.extract %53[0, 0, 0] : f32 from vector<1x1x1xf32>
    %cst_19 = arith.constant 0.000000e+00 : f32
    %55 = arith.addf %cst_19, %54 : f32
    %cst_20 = arith.constant dense<0.000000e+00> : vector<16xf32>
    %56 = vector.multi_reduction <add>, %44, %cst_20 [0] : vector<15x16xf32> to vector<16xf32>
    %57 = vector.shape_cast %56 : vector<16xf32> to vector<1x16xf32>
    %58 = vector.shape_cast %57 : vector<1x16xf32> to vector<1x1x16xf32>
    %cst_21 = arith.constant dense<0.000000e+00> : vector<1xf32>
    %59 = vector.multi_reduction <add>, %58, %cst_21 [1, 2] : vector<1x1x16xf32> to vector<1xf32>
    %60 = vector.shape_cast %59 : vector<1xf32> to vector<1x1x1xf32>
    %61 = vector.extract %60[0, 0, 0] : f32 from vector<1x1x1xf32>
    %cst_22 = arith.constant 0.000000e+00 : f32
    %62 = arith.addf %cst_22, %61 : f32
    %63 = tpu.iota {dimensions = array<i32: 0>} : vector<8x128xi32>
    %c0_i32 = arith.constant 0 : i32
    %64 = vector.broadcast %c0_i32 : i32 to vector<8x128xi32>
    %65 = arith.cmpi eq, %63, %64 : vector<8x128xi32>
    %c1_i32 = arith.constant 1 : i32
    %66 = vector.broadcast %c1_i32 : i32 to vector<8x128xi32>
    %67 = arith.cmpi eq, %63, %66 : vector<8x128xi32>
    %c2_i32 = arith.constant 2 : i32
    %68 = vector.broadcast %c2_i32 : i32 to vector<8x128xi32>
    %69 = arith.cmpi eq, %63, %68 : vector<8x128xi32>
    %c3_i32 = arith.constant 3 : i32
    %70 = vector.broadcast %c3_i32 : i32 to vector<8x128xi32>
    %71 = arith.cmpi eq, %63, %70 : vector<8x128xi32>
    %cst_23 = arith.constant 0.000000e+00 : f32
    %72 = vector.broadcast %32 : f32 to vector<8x128xf32>
    %73 = vector.broadcast %cst_23 : f32 to vector<8x128xf32>
    %74 = arith.select %71, %72, %73 : vector<8x128xi1>, vector<8x128xf32>
    %75 = vector.broadcast %62 : f32 to vector<8x128xf32>
    %76 = arith.select %69, %75, %74 : vector<8x128xi1>, vector<8x128xf32>
    %77 = vector.broadcast %26 : f32 to vector<8x128xf32>
    %78 = arith.select %67, %77, %76 : vector<8x128xi1>, vector<8x128xf32>
    %79 = vector.broadcast %55 : f32 to vector<8x128xf32>
    %80 = arith.select %65, %79, %78 : vector<8x128xi1>, vector<8x128xf32>
    %c0_i32_24 = arith.constant 0 : i32
    %81 = arith.cmpi eq, %arg1, %c0_i32_24 : i32
    %82 = arith.extui %81 : i1 to i32
    %c0_i32_25 = arith.constant 0 : i32
    %83 = arith.cmpi ne, %82, %c0_i32_25 : i32
    scf.if %83 {
      %cst_30 = arith.constant 0.000000e+00 : f32
      %87 = vector.broadcast %cst_30 : f32 to vector<8x128xf32>
      %c0_31 = arith.constant 0 : index
      %c0_32 = arith.constant 0 : index
      %88 = vector.load %arg4[%c0_31, %c0_32] : memref<8x128xf32, #tpu.memory_space<vmem>>, vector<8x128xf32>
      tpu.vector_store %arg4[%c0_31, %c0_32], %87 {strides = array<i32>} : memref<8x128xf32, #tpu.memory_space<vmem>>, vector<8x128xf32>,
    } else {
    }
    %c0_26 = arith.constant 0 : index
    %c0_27 = arith.constant 0 : index
    %84 = vector.load %arg4[%c0_26, %c0_27] : memref<8x128xf32, #tpu.memory_space<vmem>>, vector<8x128xf32>
    %85 = arith.addf %84, %80 : vector<8x128xf32>
    %c0_28 = arith.constant 0 : index
    %c0_29 = arith.constant 0 : index
    %86 = vector.load %arg4[%c0_28, %c0_29] : memref<8x128xf32, #tpu.memory_space<vmem>>, vector<8x128xf32>
    tpu.vector_store %arg4[%c0_28, %c0_29], %85 {strides = array<i32>} : memref<8x128xf32, #tpu.memory_space<vmem>>, vector<8x128xf32>,
    return
  }
  func.func @transform_0(%arg0: i32, %arg1: i32) -> (i32, i32, i32, i32) {
    %c0_i32 = arith.constant 0 : i32
    %c0_i32_0 = arith.constant 0 : i32
    %c0_i32_1 = arith.constant 0 : i32
    return %arg0, %c0_i32, %arg1, %c0_i32_0 : i32, i32, i32, i32
  }
  func.func @transform_1(%arg0: i32, %arg1: i32) -> (i32, i32, i32, i32) {
    %c0_i32 = arith.constant 0 : i32
    %c0_i32_0 = arith.constant 0 : i32
    %c0_i32_1 = arith.constant 0 : i32
    return %arg0, %c0_i32, %arg1, %c0_i32_0 : i32, i32, i32, i32
  }
  func.func @transform_2(%arg0: i32, %arg1: i32) -> (i32, i32) {
    %c0_i32 = arith.constant 0 : i32
    %c0_i32_0 = arith.constant 0 : i32
    return %arg0, %c0_i32 : i32, i32
  }
}

</mosaic_0001>

<bundles_post_ra>
// kernel: tpu_custom_call.1
= control target key start
LH: loop header
LB: loop body
LE: loop exit
PB: predicated region body
PF: predicated region fallthrough
CT: control target
= control target key end

     0   :  { %7 = vsyncpa [#allocation5], 0  ;;  %s1143_s0 = inlined_call_operand.hbm [shape: f32[2,4,16,16], index: 0, kind: input, shape index: {}]   ;;  %s1144_s1 = inlined_call_operand.hbm [shape: f32[2,1,16,16], index: 1, kind: input, shape index: {}]   ;;  %s1145_s2 = inlined_call_operand.hbm [shape: f32[16,128], index: 2, kind: output, shape index: {}]  }
   0x1   :  { %9 = vsyncpa [#allocation5 + $0x1], 0 }
   0x2   :  { %10 = vsyncpa [#allocation8], 0 }
   0x3   :  { %12 = vsyncpa [#allocation8 + $0x1], 0 }
   0x4   :  { %13 = vsyncpa [#allocation6], 0 }
   0x5   :  { %15 = vsyncpa [#allocation6 + $0x1], 0  ;;  %s857_s9 = smov 0   ;;  %s859_s10 = smov 0  }
   0x6   :  { %s861_s11 = smov 0   ;;  %s863_s12 = smov 0  }
   0x7   :  { %s865_s13 = smov 0   ;;  %s867_s14 = smov 0  }
   0x8 LB: > { %s595_s15 = sadd.s32 4294967295, %s834_s14   ;;  %s596_s16 = sadd.s32 4294967294, %s834_s14   ;;  %s834_s14 = sphi %s867_s14, %s21_s14   ;;  %s830_s13 = sphi %s865_s13, %s1157_s13   ;;  %s826_s12 = sphi %s863_s12, %s1156_s12   ;;  %s822_s11 = sphi %s861_s11, %s1155_s11   ;;  %s818_s10 = sphi %s859_s10, %s1154_s10   ;;  %s814_s9 = sphi %s857_s9, %s1153_s9  }
   0x9   : > { %s33_s17 = sadd.s32 1, %s830_s13  ;;  %s42_s18 = sadd.s32 1, %s822_s11 }
   0xa   : > { %p35_p0 = scmp.ge.s32.totalorder %s33_s17, 2  ;;  %p49_p1 = scmp.ne.s32.totalorder %s822_s11, %s818_s10 }
   0xb   : > { %p50_p2 = scmp.eq.s32.totalorder %s834_s14, 0  ;;  %p55_p3 = scmp.ne.s32.totalorder %s818_s10, %s814_s9 }
   0xc   : > { %s1159_s17 = smov (%p35_p0, %s33_s17), 0  ;;  %p56_p5 = scmp.eq.s32.totalorder %s595_s15, 0 }
   0xd   : > { %p898_p4 = por %p50_p2, %p49_p1  ;;  %s37_s20 = ssub.s32 %s830_s13, %s1159_s17 }
   0xe   : > { %p107_p6 = scmp.eq.s32.totalorder %s595_s15, 1  ;;  %p40_p7 = scmp.eq.s32.totalorder %s37_s20, 0 }
   0xf   : > { %p904_p8 = por %p56_p5, %p55_p3  ;;  %p113_p10 = scmp.eq.s32.totalorder %s596_s16, 1 }
  0x10   : > { %p908_p9 = por %p107_p6, %p49_p1  ;;  %p640_p13 = scmp.lt.s32.totalorder %s834_s14, 2 }
  0x11   : > { %s913_s23 = scalar_select %p40_p7, %s822_s11, %s42_s18  }
  0x12   : > { %p915_p11 = por %p113_p10, %p55_p3  ;;  %s922_s25 = sand.u32 1, %s822_s11  }
  0x13   : > { %s599_s26 = sshll.u32 %s922_s25, 6  ;;  %s613_s27 = sshll.u32 %s830_s13, 10 }
  0x14   : > { %s145_s30 = scalar_lea.hbm %s1143_s0, %s613_s27  ;;  %s137_s3 = scalar_lea.vmem [#allocation4], %s599_s26 }
  0x15   : > { %s146_s4 = sshll.u32 %s137_s3, 4  ;;  %p931_p0 = pnand %p640_p13, %p898_p4  ;;  %s147_s4 = int_to_ptr.vmem [resolvable:$true] %s146_s4 }
  0x16   : > { %p605_p1 = scmp.ge.s32.totalorder %s834_s14, 1  ;;  %s134_s6 = scalar_lea.sflag [#allocation5], %s922_s25 }
  0x17   : > { %p696_p2 = pneg %p931_p0  ;;  %s707_s7 = scalar_lea.vmem %s147_s4, 1024 }
  0x18   : > { %p708_p3 = scmp.ne.s32.totalorder %s147_s4, %s707_s7  ;;  %s836_s8 = smov [#allocation4]  }
  0x19   : > { %s712_s15 = sshll.u32 %s836_s8, 4  ;;  %s713_s15 = int_to_ptr.vmem [resolvable:$false] %s712_s15 }
  0x1a   : > { %p710_p5 = pnand %p708_p3, %p696_p2  ;;  %s714_s16 = scalar_lea.vmem %s713_s15, 2048 }
  0x1b   : > { %p715_p4 = scmp.lt.s32.totalorder %s147_s4, %s713_s15  ;;  %p716_p7 = scmp.lt.s32.totalorder %s714_s16, %s707_s7 }
  0x1c   : > { %p711_p6 = pneg %p710_p5 }
  0x1d   : > { %p717_p10 = por %p716_p7, %p715_p4 }
  0x1f   : > { %p718_p13 = pnand %p717_p10, %p711_p6 }
  0x21   : > { %721 = shalt.err (!%p718_p13)
}
  0x22   : > { %s837_s18 = smov 128   ;;  %s838_s19 = smov 8  }
  0x23   : > { %632 = dma.hbm_to_vmem [thread:$0]  (!%p931_p0), %s145_s30, 1024, %s147_s4, %s134_s6, %s837_s18, %s837_s18, %s838_s19  }
  0x24   : > { %p177_p3 = scmp.lt.s32.totalorder %s834_s14, 3  ;;  %s602_s20 = sshll.u32 %s922_s25, 4 }
  0x25   : > { %s614_s26 = sshll.u32 %s830_s13, 8  ;;  %s160_s7 = scalar_lea.vmem [#allocation7], %s602_s20 }
  0x26   : > { %p949_p5 = pnand %p605_p1, %p177_p3  ;;  %s168_s3 = scalar_lea.hbm %s1144_s1, %s614_s26 }
  0x27   : > { %s169_s8 = sshll.u32 %s160_s7, 4  ;;  %s157_s15 = scalar_lea.sflag [#allocation8], %s922_s25  ;;  %s170_s8 = int_to_ptr.vmem [resolvable:$true] %s169_s8 }
  0x28   : > { %s735_s16 = scalar_lea.vmem %s170_s8, 256  ;;  %s839_s30 = smov [#allocation7]  }
  0x29   : > { %p736_p6 = scmp.ne.s32.totalorder %s170_s8, %s735_s16  ;;  %s740_s4 = sshll.u32 %s839_s30, 4  ;;  %s741_s4 = int_to_ptr.vmem [resolvable:$false] %s740_s4 }
  0x2a   : > { %s742_s6 = scalar_lea.vmem %s741_s4, 512  ;;  %p743_p1 = scmp.lt.s32.totalorder %s170_s8, %s741_s4 }
  0x2b   : > { %p738_p4 = pnand %p736_p6, %p696_p2  ;;  %p744_p10 = scmp.lt.s32.totalorder %s742_s6, %s735_s16 }
  0x2d   : > { %p739_p7 = pneg %p738_p4  ;;  %p745_p13 = por %p744_p10, %p743_p1 }
  0x2f   : > { %p746_p3 = pnand %p745_p13, %p739_p7 }
  0x31   : > { %749 = shalt.err (!%p746_p3)
}
  0x32   : > { %635 = dma.hbm_to_vmem [thread:$0]  (!%p931_p0), %s168_s3, 256, %s170_s8, %s157_s15, %s837_s18, %s837_s18, %s838_s19  }
  0x33   : > { %181 = sbr.rel (%p949_p5) target bundleno = 434 (0x1b2), region = 28  ;;  %s965_s25 = sand.u32 (!%p949_p5), 1, %s818_s10  }
  0x34   : > { %s606_s20 = sshll.u32 (!%p949_p5), %s965_s25, 6  ;;  %s184_s26 = scalar_lea.sflag (!%p949_p5), [#allocation5], %s965_s25 }
  0x35   : > { %s969_s28 = scalar_lea.vmem (!%p949_p5), [#allocation4], %s606_s20 }
  0x38   : > { %801 = dma.done.wait (%p904_p8), %s184_s26, 1024  }
  0x39   : > { %803 = vsyncadd (%p904_p8), %s184_s26, 4294966272  ;;  %s607_s5 = sshll.u32 %s965_s25, 4  ;;  %s193_s18 = scalar_lea.sflag [#allocation8], %s965_s25 }
  0x3a   : > { %s977_s19 = scalar_lea.vmem [#allocation7], %s607_s5 }
  0x3b   : > { %805 = dma.done.wait (%p904_p8), %s193_s18, 256  }
  0x3c   : > { %807 = vsyncadd (%p904_p8), %s193_s18, 4294967040  ;;  %v283_v0 = vlaneseq  ;;  %v986_v2 = vld [vmem:[%s969_s28 + $0x10] sm:$0xff]  ;;  %v989_v3 = vld [vmem:[%s969_s28] sm:$0xff]  ;;  %vm350_vm0 = vcmask 1046528   ;;  %s840_s27 = smov 127   ;;  %vm401_vm1 = vcmask 129024  }
  0x3d   : > { %v992_v4 = vld [vmem:[%s969_s28 + $0x18] sm:$0xff]  ;;  %247 = vrot.lane.b32.xlu1 %v986_v2, %s840_s27  ;;  %v354_v5 = vrot.slane %v986_v2, 1  ;;  %243 = vrot.lane.b32.xlu0 %v989_v3, %s840_s27  ;;  %v351_v6 = vrot.slane %v989_v3, 1  ;;  %v1002_v8 = vld [vmem:[%s969_s28 + $0x8] sm:$0xff]  ;;  %vm393_vm2 = vcmask 130048   ;;  %vm292_vm4 = vcmask 121856  }
  0x3e   : > { %v983_v1 = vshrl.u32 %v283_v0, 7  ;;  %v355_v7 = vrot.slane %v992_v4, 1  ;;  %v1005_v9 = vld [vmem:[%s969_s28 + $0x28] sm:$0xff]  ;;  %v352_v10 = vrot.slane %v1002_v8, 1  ;;  %v1010_v12 = vld [vmem:[%s969_s28 + $0x20] sm:$0xff]  ;;  %v1013_v13 = vld [vmem:[%s969_s28 + $0x38] sm:$0xff] }
  0x3f   : > { %v358_v11 = vrot.slane %v1005_v9, 1  ;;  %v357_v17 = vrot.slane %v1010_v12, 1  ;;  %v361_v18 = vrot.slane %v1013_v13, 1  ;;  %v1032_v27 = vld [vmem:[%s969_s28 + $0x30] sm:$0xff]  ;;  %v1047_v43 = vld [vmem:[%s977_s19 + $0x8] sm:$0xff]  ;;  %vm422_vm5 = vcmask 122880  }
  0x40   : > { %v285_v14 = vadd.s32 8, %v983_v1  ;;  %v374_v15 = vsub.f32 %v992_v4, %v355_v7  ;;  %v356_v16 = vsel %vm350_vm0, %v354_v5, %v355_v7  ;;  %v372_v20 = vsub.f32 %v1002_v8, %v352_v10  ;;  %v1055_v52 = vld [vmem:[%s977_s19] sm:$0xff]  ;;  %s608_s29 = sshll.u32 %s965_s25, 3  ;;  %s610_s15 = sshll.u32 %s826_s12, 7 }
  0x41   : > { %v373_v19 = vsub.f32 %v986_v2, %v356_v16  ;;  %v353_v21 = vsel %vm350_vm0, %v351_v6, %v352_v10  ;;  %v376_v22 = vsub.f32 %v1005_v9, %v358_v11  ;;  %249 = vrot.lane.b32.xlu1 %v992_v4, %s840_s27  ;;  %245 = vrot.lane.b32.xlu0 %v1002_v8, %s840_s27  ;;  %v360_v35 = vrot.slane %v1032_v27, 1  ;;  %s221_s16 = scalar_lea.vmem [#allocation9], %s608_s29  ;;  %s486_s20 = scalar_lea.hbm %s1145_s2, %s610_s15 }
  0x42   : > { %v382_v23 = vand.u32 2147483647, %v374_v15  ;;  %v371_v24 = vsub.f32 %v989_v3, %v353_v21  ;;  %v359_v25 = vsel %vm350_vm0, %v357_v17, %v358_v11  ;;  %v378_v26 = vsub.f32 %v1013_v13, %v361_v18  ;;  %s488_s30 = sshll.u32 %s221_s16, 4  ;;  %s475_s26 = scalar_lea.sflag [#allocation6], %s965_s25  ;;  %s489_s30 = int_to_ptr.vmem [resolvable:$true] %s488_s30 }
  0x43   : > { %v381_v28 = vand.u32 2147483647, %v373_v19  ;;  %v380_v29 = vand.u32 2147483647, %v372_v20  ;;  %v384_v30 = vand.u32 2147483647, %v376_v22  ;;  %v375_v31 = vsub.f32 %v1010_v12, %v359_v25 }
  0x44   : > { %v403_v32 = vsel %vm401_vm1, %v382_v23, 0.0  ;;  %v379_v33 = vand.u32 2147483647, %v371_v24  ;;  %v386_v34 = vand.u32 2147483647, %v378_v26  ;;  %v362_v42 = vsel %vm350_vm0, %v360_v35, %v361_v18  ;;  %s750_s28 = scalar_lea.vmem %s489_s30, 128 }
  0x45   : > { %v402_v36 = vsel %vm401_vm1, %v380_v29, 0.0  ;;  %v405_v37 = vsel %vm401_vm1, %v384_v30, 0.0  ;;  %v383_v38 = vand.u32 2147483647, %v375_v31  ;;  %v395_v39 = vsel %vm393_vm2, %v381_v28, 0.0  ;;  %253 = vrot.lane.b32.xlu1 %v1005_v9, %s840_s27  ;;  %251 = vrot.lane.b32.xlu0 %v1010_v12, %s840_s27  ;;  %p751_p8 = scmp.ne.s32.totalorder %s489_s30, %s750_s28  ;;  %s841_s5 = smov [#allocation9]  }
  0x46   : > { %v404_v40 = vadd.f32 %v403_v32, %v402_v36  ;;  %v394_v41 = vsel %vm393_vm2, %v379_v33, 0.0  ;;  %vm390_vm3 = vcmp.lt.s32.totalorder %v285_v14, 15  ;;  %v407_v46 = vsel %vm401_vm1, %v386_v34, 0.0  ;;  %s754_s18 = sshll.u32 %s841_s5, 4  ;;  %s755_s18 = int_to_ptr.vmem [resolvable:$false] %s754_s18 }
  0x47   : > { %v397_v44 = vsel %vm393_vm2, %v383_v38, 0.0  ;;  %v396_v45 = vadd.f32 %v395_v39, %v394_v41  ;;  %v377_v47 = vsub.f32 %v1032_v27, %v362_v42  ;;  %v392_v51 = vsel %vm390_vm3, %v1047_v43, 0.0  ;;  %p752_p0 = pnand %p751_p8, %p908_p9  ;;  %s756_s12 = scalar_lea.vmem %s755_s18, 256 }
  0x48   : > { %v406_v48 = vadd.f32 %v405_v37, %v404_v40  ;;  %v434_v54 = vsel %vm393_vm2, %v1055_v52, 0.0  ;;  %v435_v55 = vsel %vm401_vm1, %v392_v51, 0.0  ;;  %v331_v60 = vsel %vm292_vm4, %v1055_v52, 0.0  ;;  %p757_p5 = scmp.lt.s32.totalorder %s489_s30, %s755_s18  ;;  %p758_p6 = scmp.lt.s32.totalorder %s756_s12, %s750_s28 }
  0x49   : > { %v398_v49 = vadd.f32 %v397_v44, %v396_v45  ;;  %v385_v50 = vand.u32 2147483647, %v377_v47  ;;  %257 = vrot.lane.b32.xlu1 %v1013_v13, %s840_s27  ;;  %255 = vrot.lane.b32.xlu0 %v1032_v27, %s840_s27  ;;  %v436_v57 = vadd.f32 %v435_v55, %v434_v54  ;;  %v332_v61 = vsel %vm292_vm4, %v1047_v43, 0.0  ;;  %p753_p2 = pneg %p752_p0 }
  0x4a   : > { %v408_v53 = vadd.f32 %v407_v46, %v406_v48  ;;  %v333_v6 = vadd.f32 %v332_v61, %v331_v60  ;;  %vm320_vm6 = vcmask 114688   ;;  %vm457_vm7 = vcmp.eq.s32.totalorder %v983_v1, 3  ;;  %p759_p4 = por %p758_p6, %p757_p5 }
  0x4b   : > { %v399_v56 = vsel %vm393_vm2, %v385_v50, 0.0  ;;  %v437_v63 = vrot.slane %v436_v57, 4  ;;  %vm456_vm8 = vcmp.eq.s32.totalorder %v983_v1, 2  ;;  %vm455_vm9 = vcmp.eq.s32.totalorder %v983_v1, 1 }
  0x4c   : > { %v400_v58 = vadd.f32 %v399_v56, %v398_v49  ;;  %v410_v59 = vsel %vm390_vm3, %v408_v53, 0.0  ;;  %v334_v16 = vrot.slane %v333_v6, 4  ;;  %vm454_vm10 = vcmp.eq.s32.totalorder %v983_v1, 0  ;;  %p760_p7 = pnand %p759_p4, %p753_p2 }
  0x4d   : > { %v412_v62 = vmul.f32 %v410_v59, %v392_v51  ;;  %v438_v7 = vadd.f32 %v437_v63, %v436_v57 }
  0x4e   : > { %v411_v0 = vmul.f32 %v400_v58, %v1055_v52  ;;  %v335_v21 = vadd.f32 %v334_v16, %v333_v6 }
  0x4f   : > { %v414_v5 = vsel %vm401_vm1, %v412_v62, 0.0  ;;  %v439_v15 = vrot.slane %v438_v7, 2 }
  0x50   : > { %v413_v10 = vsel %vm393_vm2, %v411_v0, 0.0  ;;  %v336_v25 = vrot.slane %v335_v21, 2 }
  0x51   : > { %v415_v11 = vadd.f32 %v414_v5, %v413_v10  ;;  %v440_v17 = vadd.f32 %v439_v15, %v438_v7 }
  0x52   : > { %v337_v28 = vadd.f32 %v336_v25, %v335_v21 }
  0x53   : > { %v416_v14 = vrot.slane %v415_v11, 4  ;;  %v441_v19 = vrot.slane %v440_v17, 1 }
  0x54   : > { %v338_v30 = vrot.slane %v337_v28, 1 }
  0x55   : > { %v417_v18 = vadd.f32 %v416_v14, %v415_v11  ;;  %v442_v22 = vadd.f32 %v441_v19, %v440_v17 }
  0x56   : > { %v339_v32 = vadd.f32 %v338_v30, %v337_v28 }
  0x57   : > { %v418_v20 = vrot.slane %v417_v18, 2  ;;  %v1073_v23 = vsel %vm422_vm5, %v442_v22, 0.0 }
  0x58   : > { %v340_v33 = vsel %vm320_vm6, %v339_v32, 0.0 }
  0x59   : > { %v419_v24 = vadd.f32 %v418_v20, %v417_v18 }
  0x5b   : > { %v420_v26 = vrot.slane %v419_v24, 1 }
  0x5d   : > { %v421_v29 = vadd.f32 %v420_v26, %v419_v24 }
  0x5f   : > { %v423_v31 = vsel %vm422_vm5, %v421_v29, 0.0 }
  0x68   : > { %424 = vadd.xlane.f32.xlu0 %v423_v31 }
  0x6d   : > { %341 = vadd.xlane.f32.xlu1 %v340_v33 }
  0xaf   : > { %v248_v34 = vpop.permute.xlu1 %247  ;;  %v244_v35 = vpop.permute.xlu0 %243 }
  0xb0   : > { %v269_v36 = vsub.f32 %v986_v2, %v248_v34  ;;  %v267_v37 = vsub.f32 %v989_v3, %v244_v35 }
  0xb2   : > { %v277_v42 = vand.u32 2147483647, %v269_v36  ;;  %v275_v44 = vand.u32 2147483647, %v267_v37 }
  0xb3   : > { %v250_v38 = vpop.permute.xlu1 %249  ;;  %v246_v39 = vpop.permute.xlu0 %245 }
  0xb4   : > { %v270_v40 = vsub.f32 %v992_v4, %v250_v38  ;;  %v268_v41 = vsub.f32 %v1002_v8, %v246_v39  ;;  %v294_v2 = vsel %vm292_vm4, %v277_v42, 0.0  ;;  %v293_v3 = vsel %vm292_vm4, %v275_v44, 0.0 }
  0xb5   : > { %v295_v58 = vadd.f32 %v294_v2, %v293_v3 }
  0xb6   : > { %v278_v45 = vand.u32 2147483647, %v270_v40  ;;  %v276_v46 = vand.u32 2147483647, %v268_v41 }
  0xb7   : > { %v254_v47 = vpop.permute.xlu1 %253  ;;  %v252_v48 = vpop.permute.xlu0 %251 }
  0xb8   : > { %v272_v49 = vsub.f32 %v1005_v9, %v254_v47  ;;  %v271_v50 = vsub.f32 %v1010_v12, %v252_v48  ;;  %v301_v51 = vsel %vm292_vm4, %v278_v45, 0.0  ;;  %v300_v4 = vsel %vm292_vm4, %v276_v46, 0.0 }
  0xb9   : > { %v302_v59 = vadd.f32 %v301_v51, %v300_v4 }
  0xba   : > { %v280_v53 = vand.u32 2147483647, %v272_v49  ;;  %v279_v8 = vand.u32 2147483647, %v271_v50 }
  0xbb   : > { %v258_v54 = vpop.permute.xlu1 %257  ;;  %v256_v55 = vpop.permute.xlu0 %255 }
  0xbc   : > { %v303_v56 = vsel %vm292_vm4, %v280_v53, 0.0  ;;  %v296_v57 = vsel %vm292_vm4, %v279_v8, 0.0  ;;  %v274_v9 = vsub.f32 %v1013_v13, %v258_v54  ;;  %v273_v12 = vsub.f32 %v1032_v27, %v256_v55 }
  0xbd   : > { %v304_v62 = vadd.f32 %v303_v56, %v302_v59  ;;  %v297_v63 = vadd.f32 %v296_v57, %v295_v58 }
  0xbe   : > { %v282_v60 = vand.u32 2147483647, %v274_v9  ;;  %v281_v61 = vand.u32 2147483647, %v273_v12 }
  0xc0   : > { %v305_v0 = vsel %vm292_vm4, %v282_v60, 0.0  ;;  %v298_v5 = vsel %vm292_vm4, %v281_v61, 0.0 }
  0xc1   : > { %v306_v6 = vadd.f32 %v305_v0, %v304_v62  ;;  %v299_v7 = vadd.f32 %v298_v5, %v297_v63 }
  0xc3   : > { %v310_v10 = vmul.f32 %v306_v6, %v1047_v43  ;;  %v309_v11 = vmul.f32 %v299_v7, %v1055_v52 }
  0xc5   : > { %v312_v13 = vsel %vm292_vm4, %v310_v10, 0.0  ;;  %v311_v27 = vsel %vm292_vm4, %v309_v11, 0.0 }
  0xc6   : > { %v313_v15 = vadd.f32 %v312_v13, %v311_v27 }
  0xc8   : > { %v314_v14 = vrot.slane %v313_v15, 4 }
  0xca   : > { %v315_v16 = vadd.f32 %v314_v14, %v313_v15 }
  0xcc   : > { %v316_v17 = vrot.slane %v315_v16, 2 }
  0xce   : > { %v317_v18 = vadd.f32 %v316_v17, %v315_v16 }
  0xd0   : > { %v318_v19 = vrot.slane %v317_v18, 1 }
  0xd2   : > { %v319_v20 = vadd.f32 %v318_v19, %v317_v18 }
  0xd4   : > { %v321_v21 = vsel %vm320_vm6, %v319_v20, 0.0 }
  0xd5   : > { %322 = vadd.xlane.f32.xlu0 %v321_v21 }
  0xd9   : > { %444 = vadd.xlane.f32.xlu0 %v1073_v23 }
  0xf1   : > { %v425_v43 = vpop.xlane.xlu0 %424 }
  0xf2   : > { %v426_v52 = vrot.slane %v425_v43, 4 }
  0xf4   : > { %v427_v26 = vadd.f32 %v426_v52, %v425_v43 }
  0xf6   : > { %v342_v22 = vpop.xlane.xlu1 %341  ;;  %v428_v30 = vrot.slane %v427_v26, 2 }
  0xf7   : > { %v343_v24 = vrot.slane %v342_v22, 4 }
  0xf8   : > { %v429_v37 = vadd.f32 %v428_v30, %v427_v26 }
  0xf9   : > { %v344_v25 = vadd.f32 %v343_v24, %v342_v22 }
  0xfa   : > { %v430_v42 = vrot.slane %v429_v37, 1 }
  0xfb   : > { %v345_v28 = vrot.slane %v344_v25, 2 }
  0xfc   : > { %v431_v47 = vadd.f32 %v430_v42, %v429_v37 }
  0xfd   : > { %v346_v33 = vadd.f32 %v345_v28, %v344_v25 }
  0xff   : > { %v347_v23 = vrot.slane %v346_v33, 1 }
 0x101   : > { %v348_v46 = vadd.f32 %v347_v23, %v346_v33 }
 0x15e   : > { %v323_v29 = vpop.xlane.xlu0 %322 }
 0x15f   : > { %v324_v31 = vrot.slane %v323_v29, 4 }
 0x161   : > { %v325_v32 = vadd.f32 %v324_v31, %v323_v29 }
 0x162   : > { %v445_v34 = vpop.xlane.xlu0 %444 }
 0x163   : > { %v326_v35 = vrot.slane %v325_v32, 2  ;;  %v446_v36 = vrot.slane %v445_v34, 4 }
 0x165   : > { %v447_v38 = vadd.f32 %v446_v36, %v445_v34  ;;  %v327_v39 = vadd.f32 %v326_v35, %v325_v32 }
 0x167   : > { %v448_v40 = vrot.slane %v447_v38, 2  ;;  %v328_v41 = vrot.slane %v327_v39, 1 }
 0x169   : > { %v449_v44 = vadd.f32 %v448_v40, %v447_v38  ;;  %v329_v45 = vadd.f32 %v328_v41, %v327_v39 }
 0x16b   : > { %615 = vpush %v329_v45  ;;  %v450_v48 = vrot.slane %v449_v44, 1 }
 0x16c   : > { %617 = vpush %v348_v46 }
 0x16d   : > { %619 = vpush %v431_v47  ;;  %v451_v49 = vadd.f32 %v450_v48, %v449_v44 }
 0x16f   : > { %621 = vpush %v451_v49 }
 0x19c   : > { %s616_s21 = spop %615 }
 0x19d   : > { %s618_s3 = spop %617  ;;  %v462_v51 = vstv %s616_s21 }
 0x19e   : > { %v458_v50 = vstv %s618_s3  ;;  %s620_s7 = spop %619 }
 0x19f   : > { %v459_v2 = vsel %vm457_vm7, %v458_v50, 0.0  ;;  %v464_v53 = vstv %s620_s7 }
 0x1a0   : > { %s622_s8 = spop %621 }
 0x1a1   : > { %v460_v3 = vstv %s622_s8 }
 0x1a2   : > { %v461_v4 = vsel %vm456_vm8, %v460_v3, %v459_v2 }
 0x1a3   : > { %v463_v8 = vsel %vm455_vm9, %v462_v51, %v461_v4 }
 0x1a4   : > { %v465_v54 = vsel %vm454_vm10, %v464_v53, %v463_v8 }
 0x1a5   : > { %473 = vst [vmem:[%s221_s16] sm:$0xff] %v465_v54 }
 0x1a6   : > { %763 = shalt.err (!%p760_p7)
}
 0x1a7   : > { %s764_s19 = scalar_lea.hbm %s486_s20, 128  ;;  %s768_s21 = scalar_lea.hbm %s1145_s2, 256 }
 0x1a8   : > { %p765_p1 = scmp.ne.s32.totalorder %s486_s20, %s764_s19  ;;  %p769_p3 = scmp.lt.s32.totalorder %s486_s20, %s1145_s2 }
 0x1a9   : > { %p770_p8 = scmp.lt.s32.totalorder %s768_s21, %s764_s19 }
 0x1aa   : > { %p766_p10 = pnand %p765_p1, %p908_p9 }
 0x1ab   : > { %p771_p0 = por %p770_p8, %p769_p3 }
 0x1ac   : > { %p767_p13 = pneg %p766_p10 }
 0x1ae   : > { %p772_p12 = pnand %p771_p0, %p767_p13 }
 0x1b0   : > { %775 = shalt.err (!%p772_p12)
}
 0x1b1   : > { %627 = dma.vmem_to_hbm [thread:$0]  (%p908_p9), %s489_s30, 128, %s486_s20, %s475_s26  }
 0x1b2 PF: > { %s500_s7 = sand.u32 1, %s814_s9   ;;  %p1152_p2 = scmp.ge.s32.totalorder %s834_s14, 2 }
 0x1b3   : > { %s501_s8 = scalar_lea.sflag [#allocation6], %s500_s7 }
 0x1b4   : > { %p637_p5 = pnand %p1152_p2, %p915_p11 }
 0x1b6   : > { %p638_p6 = pneg %p637_p5 }
 0x1b8   : > { %809 = dma.done.wait (%p638_p6), %s501_s8, 128  }
 0x1b9   : > { %811 = vsyncadd (%p638_p6), %s501_s8, 4294967168  ;;  %s21_s14 = sadd.s32 1, %s834_s14   ;;  %s1153_s9 = smov %s818_s10 }
 0x1ba   : > { %p18_p4 = scmp.ge.s32.totalorder %s21_s14, 4   ;;  %s1154_s10 = smov %s822_s11 }
 0x1bb   : > { %s1155_s11 = smov %s913_s23  ;;  %s1156_s12 = smov %s830_s13 }
 0x1bc   : > { %s1157_s13 = smov %s1159_s17  ;;  %20 = sbr.rel (!%p18_p4) target bundleno = 8 (0x8), region = 90 }
 0x1c1   :  { %506 = vsyncpa [#allocation5], 1 }
 0x1c2   :  { %508 = vsyncpa [#allocation5 + $0x1], 1 }
 0x1c3   :  { %509 = vsyncpa [#allocation8], 1 }
 0x1c4   :  { %511 = vsyncpa [#allocation8 + $0x1], 1 }
 0x1c5   :  { %512 = vsyncpa [#allocation6], 1 }
 0x1c6   :  { %514 = vsyncpa [#allocation6 + $0x1], 1 }

</bundles_post_ra>
